<compile_context>
chip_gen: v6e
topology: v6e:2x2x1
jax: 0.10.0
libtpu: 0.0.40
codegen_flags: <defaults>
</compile_context>

<pallas_src>
import numpy as np
import jax
import jax.numpy as jnp
from jax.experimental import pallas as pl
from jax.experimental.pallas import tpu as pltpu


def _round_up(x, m):
    return (x + m - 1) // m * m


def _patch_embed_kernel(p_ref, w_ref, pos_ref, o_ref):
    # p:   (1, TN, K_in)  flattened patch pixels for TN patches of one image
    # w:   (K_in, dim)    reshaped conv weight (resident across the whole grid)
    # pos: (TN, dim)      position-embedding rows for this patch tile
    # o:   (1, TN, dim)
    p = p_ref[0]                                                       # (TN, K_in)
    acc = jnp.dot(p, w_ref[...], preferred_element_type=jnp.float32)   # MXU matmul
    o_ref[0] = (acc + pos_ref[...].astype(jnp.float32)).astype(o_ref.dtype)


def image_embeddings_forward(pixel_values, conv_weight, pos_weight, patch_size,
                             *, patch_tile=None):
    """Forward pass of ImageEmbeddings.

    pixel_values: (B, C, H, W) float32
    conv_weight:  (dim, C, P, P)   == nn.Conv2d(C, dim, P, stride=P, bias=False).weight
    pos_weight:   (num_patches, dim) == nn.Embedding(num_patches, dim).weight
    returns:      (B, num_patches, dim)
    """
    B, C, H, W = pixel_values.shape
    P = patch_size
    dim = conv_weight.shape[0]
    gh, gw = H // P, W // P
    num_patches = gh * gw
    k_in = C * P * P
    assert pos_weight.shape == (num_patches, dim)

    # --- im2col patchify: XLA-side layout plumbing. Inner flattening order is
    #     (c, kh, kw), matching conv_weight.reshape(dim, C*P*P). ----------------
    patches = pixel_values.reshape(B, C, gh, P, gw, P)
    patches = patches.transpose(0, 2, 4, 1, 3, 5).reshape(B, num_patches, k_in)
    w2d = conv_weight.reshape(dim, k_in).T                             # (k_in, dim)

    # --- patch-axis tiling: multiple of 8 (sublane); pad + slice if ragged -----
    if patch_tile is None:
        # Double-buffered VMEM budget: (TN*k_in + k_in*dim + TN*dim + TN*dim)*4B*2.
        # 256 stays well under the 32 MiB scoped default (and v7x's 64 MiB phys).
        patch_tile = 256
    patch_tile = max(8, min(patch_tile, _round_up(num_patches, 8)))
    np_pad = _round_up(num_patches, patch_tile)
    if np_pad != num_patches:
        patches = jnp.pad(patches, ((0, 0), (0, np_pad - num_patches), (0, 0)))
        pos = jnp.pad(pos_weight, ((0, np_pad - num_patches), (0, 0)))
    else:
        pos = pos_weight

    grid = (B, np_pad // patch_tile)
    flops = 2 * B * np_pad * k_in * dim
    bytes_accessed = 4 * (B * np_pad * k_in + k_in * dim + np_pad * dim
                          + B * np_pad * dim)

    out = pl.pallas_call(
        _patch_embed_kernel,
        out_shape=jax.ShapeDtypeStruct((B, np_pad, dim), pixel_values.dtype),
        grid_spec=pltpu.PrefetchScalarGridSpec(
            num_scalar_prefetch=0,
            grid=grid,
            in_specs=[
                pl.BlockSpec((1, patch_tile, k_in), lambda b, i: (b, i, 0)),
                pl.BlockSpec((k_in, dim), lambda b, i: (0, 0)),        # weight resident
                pl.BlockSpec((patch_tile, dim), lambda b, i: (i, 0)),  # pos per tile
            ],
            out_specs=pl.BlockSpec((1, patch_tile, dim), lambda b, i: (b, i, 0)),
        ),
        compiler_params=pltpu.CompilerParams(
            dimension_semantics=("parallel", "parallel")),
        cost_estimate=pl.CostEstimate(flops=flops, transcendentals=0,
                                      bytes_accessed=bytes_accessed),
    )(patches, w2d, pos)

    if np_pad != num_patches:
        out = out[:, :num_patches, :]
    return out


if __name__ == "__main__":
    # Small config implied by the module: 3-channel 16x16 image, patch 4 -> 16
    # patches, dim=32, batch=2.
    batch, channels, image_size, patch_size, dim = 2, 3, 16, 4, 32
    num_patches = (image_size // patch_size) ** 2

    key = jax.random.PRNGKey(0)
    k_x, k_w, k_p = jax.random.split(key, 3)
    pixel_values = jax.random.normal(
        k_x, (batch, channels, image_size, image_size), dtype=jnp.float32)
    conv_weight = 0.1 * jax.random.normal(
        k_w, (dim, channels, patch_size, patch_size), dtype=jnp.float32)
    pos_weight = jax.random.normal(k_p, (num_patches, dim), dtype=jnp.float32)

    out = image_embeddings_forward(pixel_values, conv_weight, pos_weight,
                                   patch_size, patch_tile=8)   # grid = (2, 2)
    out = jax.block_until_ready(out)

    # Independent numpy reference of the PyTorch forward:
    #   conv (stride=kernel, no bias) -> flatten(2).transpose(1,2) -> + pos_emb
    x_np = np.asarray(pixel_values)
    w_np = np.asarray(conv_weight)
    pos_np = np.asarray(pos_weight)
    gh = image_size // patch_size
    xr = x_np.reshape(batch, channels, gh, patch_size, gh, patch_size)
    conv = np.einsum('bcipjq,dcpq->bdij', xr, w_np)                 # (B, dim, gh, gw)
    ref = conv.reshape(batch, dim, num_patches).transpose(0, 2, 1) + pos_np[None]

    assert out.shape == (batch, num_patches, dim), out.shape
    err = float(np.max(np.abs(np.asarray(out) - ref)))
    assert np.allclose(np.asarray(out), ref, atol=1e-3, rtol=1e-3), err

    print("KERNEL_OK")
</pallas_src>

<mosaic_0001>
module attributes {stable_mosaic.version = 11 : i64} {
  func.func @_patch_embed_kernel(%arg0: i32, %arg1: i32, %arg2: memref<1x8x48xf32, #tpu.memory_space<vmem>>, %arg3: memref<48x32xf32, #tpu.memory_space<vmem>>, %arg4: memref<8x32xf32, #tpu.memory_space<vmem>>, %arg5: memref<1x8x32xf32, #tpu.memory_space<vmem>>) attributes {dimension_semantics = [#tpu.dimension_semantics<parallel>, #tpu.dimension_semantics<parallel>], iteration_bounds = array<i64: 2, 2>, scalar_prefetch = 0 : i64, scratch_operands = 0 : i64, tpu.core_type = #tpu.core_type<tc>, window_params = [{transform_indices = @transform_0, window_bounds = array<i64: 1, 8, 48>}, {pipeline_mode = #tpu.pipeline_mode<synchronous>, transform_indices = @transform_1, window_bounds = array<i64: 48, 32>}, {transform_indices = @transform_2, window_bounds = array<i64: 8, 32>}, {transform_indices = @transform_3, window_bounds = array<i64: 1, 8, 32>}]} {
    %c0 = arith.constant 0 : index
    %c0_0 = arith.constant 0 : index
    %c0_1 = arith.constant 0 : index
    %0 = vector.load %arg2[%c0, %c0_0, %c0_1] : memref<1x8x48xf32, #tpu.memory_space<vmem>>, vector<1x8x48xf32>
    %1 = vector.shape_cast %0 : vector<1x8x48xf32> to vector<8x48xf32>
    %c0_2 = arith.constant 0 : index
    %c0_3 = arith.constant 0 : index
    %2 = vector.load %arg3[%c0_2, %c0_3] : memref<48x32xf32, #tpu.memory_space<vmem>>, vector<48x32xf32>
    %cst = arith.constant dense<0.000000e+00> : vector<8x32xf32>
    %3 = tpu.matmul %1, %2, %cst {dimension_numbers = #tpu.dot_dimension_numbers<[1], [0], [0], [1], [0, 0, 1, 1], [], []>} : vector<8x48xf32>, vector<48x32xf32>, vector<8x32xf32> -> vector<8x32xf32>
    %c0_4 = arith.constant 0 : index
    %c0_5 = arith.constant 0 : index
    %4 = vector.load %arg4[%c0_4, %c0_5] : memref<8x32xf32, #tpu.memory_space<vmem>>, vector<8x32xf32>
    %5 = arith.addf %3, %4 : vector<8x32xf32>
    %c0_6 = arith.constant 0 : index
    %c0_7 = arith.constant 0 : index
    %c0_8 = arith.constant 0 : index
    %6 = vector.load %arg5[%c0_6, %c0_7, %c0_8] : memref<1x8x32xf32, #tpu.memory_space<vmem>>, vector<1x8x32xf32>
    %7 = vector.shape_cast %6 : vector<1x8x32xf32> to vector<8x32xf32>
    %8 = vector.shape_cast %5 : vector<8x32xf32> to vector<1x8x32xf32>
    tpu.vector_store %arg5[%c0_6, %c0_7, %c0_8], %8 {strides = array<i32>} : memref<1x8x32xf32, #tpu.memory_space<vmem>>, vector<1x8x32xf32>,
    return
  }
  func.func @transform_0(%arg0: i32, %arg1: i32) -> (i32, i32, i32) {
    %c0_i32 = arith.constant 0 : i32
    %c0_i32_0 = arith.constant 0 : i32
    return %arg0, %arg1, %c0_i32 : i32, i32, i32
  }
  func.func @transform_1(%arg0: i32, %arg1: i32) -> (i32, i32) {
    %c0_i32 = arith.constant 0 : i32
    %c0_i32_0 = arith.constant 0 : i32
    %c0_i32_1 = arith.constant 0 : i32
    return %c0_i32, %c0_i32_0 : i32, i32
  }
  func.func @transform_2(%arg0: i32, %arg1: i32) -> (i32, i32) {
    %c0_i32 = arith.constant 0 : i32
    %c0_i32_0 = arith.constant 0 : i32
    return %arg1, %c0_i32 : i32, i32
  }
  func.func @transform_3(%arg0: i32, %arg1: i32) -> (i32, i32, i32) {
    %c0_i32 = arith.constant 0 : i32
    %c0_i32_0 = arith.constant 0 : i32
    return %arg0, %arg1, %c0_i32 : i32, i32, i32
  }
}

</mosaic_0001>

<bundles_post_ra>
// kernel: tpu_custom_call.1
= control target key start
LH: loop header
LB: loop body
LE: loop exit
PB: predicated region body
PF: predicated region fallthrough
CT: control target
= control target key end

     0   :  { %s779_s0 = inlined_call_operand.vmem [shape: f32[2,16,48], index: 0, kind: input, shape index: {}]   ;;  %s780_s1 = inlined_call_operand.vmem [shape: f32[48,32], index: 1, kind: input, shape index: {}]   ;;  %s781_s2 = inlined_call_operand.vmem [shape: f32[16,32], index: 2, kind: input, shape index: {}]   ;;  %s782_s3 = inlined_call_operand.hbm [shape: f32[2,16,32], index: 3, kind: output, shape index: {}]  }
   0x1   :  { %783 = sst [smem:[#allocation5_spill]] %s779_s0 }
   0x2   :  { %8 = vsyncpa [#allocation3], 0 }
   0x3   :  { %10 = vsyncpa [#allocation3 + $0x1], 0  ;;  %s628_s12 = smov 0   ;;  %s630_s13 = smov 0  }
   0x4   :  { %s632_s14 = smov 0   ;;  %s634_s15 = smov 0  }
   0x5   :  { %s636_s16 = smov 0   ;;  %s638_s17 = smov 0  }
   0x6   :  { %s640_s18 = smov 0   ;;  %s642_s19 = smov 0  }
   0x7 LB: > { %s401_s20 = sadd.s32 4294967295, %s603_s19   ;;  %s402_s21 = sadd.s32 4294967294, %s603_s19   ;;  %s603_s19 = sphi %s642_s19, %s16_s19   ;;  %s599_s18 = sphi %s640_s18, %s793_s18   ;;  %s595_s17 = sphi %s638_s17, %s792_s17   ;;  %s591_s16 = sphi %s636_s16, %s791_s16   ;;  %s587_s15 = sphi %s634_s15, %s790_s15   ;;  %s583_s14 = sphi %s632_s14, %s789_s14   ;;  %s579_s13 = sphi %s630_s13, %s788_s13   ;;  %s575_s12 = sphi %s628_s12, %s787_s12  }
   0x8   : > { %s25_s22 = sadd.s32 1, %s595_s17  ;;  %s28_s23 = sadd.s32 1, %s599_s18 }
   0x9   : > { %p26_p0 = scmp.ge.s32.totalorder %s25_s22, 2  ;;  %p122_p1 = scmp.ne.s32.totalorder %s583_s14, %s579_s13 }
   0xa   : > { %p123_p2 = scmp.eq.s32.totalorder %s401_s20, 3  ;;  %p128_p5 = scmp.ne.s32.totalorder %s579_s13, %s575_s12 }
   0xb   : > { %s795_s22 = smov (%p26_p0, %s25_s22), 0  ;;  %s797_s23 = smov (!%p26_p0, %s28_s23), %s599_s18 }
   0xc   : > { %s108_s24 = ssub.s32 %s595_s17, %s795_s22  ;;  %p679_p3 = por %p123_p2, %p122_p1 }
   0xd   : > { %p30_p4 = scmp.ge.s32.totalorder %s797_s23, 2  ;;  %p129_p6 = scmp.eq.s32.totalorder %s402_s21, 3 }
   0xe   : > { %p405_p7 = scmp.ge.s32.totalorder %s603_s19, 1  ;;  %p168_p9 = scmp.lt.s32.totalorder %s603_s19, 5 }
   0xf   : > { %s799_s23 = smov (%p30_p4, %s797_s23), 0  ;;  %p688_p8 = por %p129_p6, %p128_p5 }
  0x10   : > { %s107_s27 = ssub.s32 %s599_s18, %s799_s23  ;;  %s112_s28 = sadd.s32 1, %s583_s14 }
  0x11   : > { %s109_s29 = sor.u32 %s108_s24, %s107_s27  ;;  %p169_p10 = pnand %p405_p7, %p168_p9 }
  0x12   : > { %p110_p11 = scmp.eq.s32.totalorder %s109_s29, 0  ;;  %p199_p12 = scmp.lt.s32.totalorder (!%p169_p10), %s591_s16, 1 }
  0x13   : > { %172 = sbr.rel (%p169_p10) target bundleno = 245 (0xf5), region = 32  ;;  %p201_p13 = scmp.lt.s32.totalorder (!%p169_p10), %s587_s15, 1 }
  0x14   : > { %s697_s30 = scalar_select %p110_p11, %s583_s14, %s112_s28  }
  0x15   : > { %s786_s0 = sld [smem:[#allocation5_spill]] (!%p169_p10)  ;;  %s196_s10 = sand.u32 (!%p169_p10), 1, %s579_s13  }
  0x16   : > { %s406_s21 = sshll.u32 (!%p169_p10), %s196_s10, 3  ;;  %s412_s24 = sshll.u32 (!%p169_p10), %s591_s16, 1 }
  0x17   : > { %s307_s4 = sadd.s32 (!%p169_p10), %s587_s15, %s412_s24  ;;  %s198_s6 = scalar_lea.vmem (!%p169_p10), [#allocation2], %s406_s21 }
  0x18   : > { %v217_v0 = vld [vmem:[%s780_s1 + $0x28] sm:$0xff]  ;;  %v605_v1 = vmov 0.0   ;;  %v216_v2 = vld [vmem:[%s780_s1 + $0x20] sm:$0xff]  ;;  %vm606_vm0 = vmmov 0   ;;  %s200_s8 = scalar_select %p199_p12, %s591_s16, 1  ;;  %v215_v3 = vld [vmem:[%s780_s1 + $0x18] sm:$0xff] }
  0x19   : > { %423 = vmatprep.subr.mxu0 %v605_v1  ;;  %435 = vmatprep.mubr.msk.f32.mxu0 %vm606_vm0, %v605_v1  ;;  %s202_s11 = scalar_select %p201_p13, %s587_s15, 1  ;;  %v214_v4 = vld [vmem:[%s780_s1 + $0x10] sm:$0xff]  ;;  %v213_v5 = vld [vmem:[%s780_s1 + $0x8] sm:$0xff]  ;;  %v212_v6 = vld [vmem:[%s780_s1] sm:$0xff]  ;;  %vm219_vm1 = vcmask 392192   ;;  %vm293_vm2 = vcmask 261120  }
  0x1a   : > { %424 = vmatpush3.msra.mxu0 %v217_v0  ;;  %s407_s20 = sshll.u32 %s200_s8, 1  ;;  %s413_s5 = sshll.u32 %s307_s4, 7 }
  0x1b   : > { %425 = vmatprep.subr.mxu0 %v605_v1  ;;  %s204_s27 = sadd.s32 %s407_s20, %s202_s11  ;;  %s409_s20 = sshll.u32 %s202_s11, 3 }
  0x1c   : > { %426 = vmatpush3.msra.mxu0 %v216_v2  ;;  %s408_s28 = sshll.u32 %s204_s27, 3  ;;  %s311_s8 = sshll.u32 %s198_s6, 4  ;;  %s312_s8 = int_to_ptr.vmem [resolvable:$true] %s311_s8 }
  0x1d   : > { %427 = vmatprep.subr.mxu0 %v605_v1  ;;  %s206_s7 = scalar_lea.vmem %s786_s0, %s408_s28  ;;  %s210_s28 = scalar_lea.vmem %s781_s2, %s409_s20 }
  0x1e   : > { %428 = vmatpush3.msra.mxu0 %v215_v3  ;;  %v211_v7 = vld [vmem:[%s206_s7] sm:$0xff]  ;;  %s733_s0 = scalar_lea.hbm %s782_s3, %s413_s5  ;;  %s296_s16 = scalar_lea.sflag [#allocation3], %s196_s10 }
  0x1f   : > { %429 = vmatprep.subr.mxu0 %v605_v1  ;;  %v218_v8 = vld [vmem:[%s210_s28] sm:$0xff]  ;;  %s511_s11 = scalar_lea.vmem %s312_s8, 128  ;;  %s607_s15 = smov [#allocation2]  }
  0x20   : > { %430 = vmatpush3.msra.mxu0 %v214_v4  ;;  %p512_p0 = scmp.ne.s32.totalorder %s312_s8, %s511_s11  ;;  %s515_s20 = sshll.u32 %s607_s15, 4  ;;  %s516_s20 = int_to_ptr.vmem [resolvable:$false] %s515_s20 }
  0x21   : > { %431 = vmatprep.subr.mxu0 %v605_v1  ;;  %s517_s21 = scalar_lea.vmem %s516_s20, 256  ;;  %p518_p4 = scmp.lt.s32.totalorder %s312_s8, %s516_s20 }
  0x22   : > { %432 = vmatpush3.msra.mxu0 %v213_v5  ;;  %p513_p1 = pnand %p512_p0, %p679_p3  ;;  %p519_p5 = scmp.lt.s32.totalorder %s517_s21, %s511_s11 }
  0x23   : > { %433 = vmatprep.subr.mxu0 %v605_v1 }
  0x24   : > { %434 = vmatpush3.msra.mxu0 %v212_v6  ;;  %p514_p2 = pneg %p513_p1  ;;  %p520_p6 = por %p519_p5, %p518_p4 }
  0x25   : > { %436 = vmatmul.mubr.msk.f32.vlgmr.msra.gmra.mxu0 %vm219_vm1, %v211_v7 }
  0x26   : > { %p521_p7 = pnand %p520_p6, %p514_p2 }
  0xe5   : > { %v289_v9 = vpop.f32.mrf.mxu0 }
  0xe6   : > { %v290_v10 = vadd.f32 %v289_v9, %v218_v8 }
  0xe7   : > { %v437_v11 = vpop.f32.mrf.mxu0 }
  0xe8   : > { %294 = vst.msk [vmem:[%s198_s6] sm:$0xff] %vm293_vm2, %v290_v10 }
  0xe9   : > { %524 = shalt.err (!%p521_p7)
}
  0xea   : > { %s525_s24 = scalar_lea.hbm %s733_s0, 128  ;;  %s529_s29 = scalar_lea.hbm %s782_s3, 512 }
  0xeb   : > { %p526_p9 = scmp.ne.s32.totalorder %s733_s0, %s525_s24  ;;  %p530_p12 = scmp.lt.s32.totalorder %s733_s0, %s782_s3 }
  0xec   : > { %p531_p13 = scmp.lt.s32.totalorder %s529_s29, %s525_s24 }
  0xed   : > { %p527_p10 = pnand %p526_p9, %p679_p3 }
  0xee   : > { %p532_p0 = por %p531_p13, %p530_p12 }
  0xef   : > { %p528_p11 = pneg %p527_p10 }
  0xf1   : > { %p533_p1 = pnand %p532_p0, %p528_p11 }
  0xf3   : > { %536 = shalt.err (!%p533_p1)
}
  0xf4   : > { %438 = dma.vmem_to_hbm [thread:$0]  (%p679_p3), %s312_s8, 128, %s733_s0, %s296_s16  }
  0xf5 PF: > { %p444_p2 = scmp.ge.s32.totalorder %s603_s19, 2  ;;  %s323_s5 = sand.u32 1, %s575_s12  }
  0xf6   : > { %s324_s6 = scalar_lea.sflag [#allocation3], %s323_s5 }
  0xf7   : > { %p441_p4 = pnand %p444_p2, %p688_p8 }
  0xf9   : > { %p442_p5 = pneg %p441_p4 }
  0xfb   : > { %570 = dma.done.wait (%p442_p5), %s324_s6, 128  }
  0xfc   : > { %572 = vsyncadd (%p442_p5), %s324_s6, 4294967168  ;;  %s16_s19 = sadd.s32 1, %s603_s19   ;;  %s787_s12 = smov %s579_s13 }
  0xfd   : > { %p13_p6 = scmp.ge.s32.totalorder %s16_s19, 6   ;;  %s788_s13 = smov %s583_s14 }
  0xfe   : > { %s789_s14 = smov %s697_s30  ;;  %s790_s15 = smov %s595_s17 }
  0xff   : > { %s791_s16 = smov %s599_s18  ;;  %s792_s17 = smov %s795_s22 }
 0x100   : > { %s793_s18 = smov %s799_s23  ;;  %15 = sbr.rel (!%p13_p6) target bundleno = 7 (0x7), region = 70 }
 0x105   :  { %329 = vsyncpa [#allocation3], 1 }
 0x106   :  { %331 = vsyncpa [#allocation3 + $0x1], 1 }

</bundles_post_ra>
